<compile_context>
chip_gen: v7x
topology: tpu7x:2x2x1
jax: 0.10.0
libtpu: 0.0.40
codegen_flags: <defaults>
</compile_context>

<pallas_src>
import math

import jax
import jax.numpy as jnp
import numpy as np
from jax.experimental import pallas as pl
from jax.experimental.pallas import tpu as pltpu


def _round_up(n, m):
    return ((n + m - 1) // m) * m


def _rope_tables_cm(hw, d):
    """Channel-major interleaved-RoPE sin/cos tables (shape (d, hw), d even)
    and the signed pair-swap matrix R so that rope(t) = t*cos + (R @ t)*sin."""
    half = d // 2
    dim_t = np.arange(half, dtype=np.float32)
    inv_freq = np.exp(-dim_t * math.log(10000.0) / half)
    pe = np.arange(hw, dtype=np.float32)[:, None] * inv_freq[None, :]     # (hw, d//2)
    sin_cm = np.repeat(np.sin(pe), 2, axis=1).T.astype(np.float32)        # (d, hw)
    cos_cm = np.repeat(np.cos(pe), 2, axis=1).T.astype(np.float32)
    R = np.zeros((d, d), dtype=np.float32)
    for j in range(half):
        R[2 * j, 2 * j + 1] = -1.0    # even out gets -odd
        R[2 * j + 1, 2 * j] = 1.0     # odd  out gets +even
    return sin_cm, cos_cm, R


def spatial_nonlocal_attention(x_nchw, params):
    B, C, H, W = x_nchw.shape
    HW = H * W
    RD = params["q_w"].shape[0]
    RDP = RD + (RD % 2)                  # RoPE pads the q/k channel dim to even
    RDS = _round_up(RDP, 8)              # sublane-aligned q/qh/k/kh segment rows
    CP = _round_up(C, 8)                 # sublane-aligned channel dim
    ONES = C                             # all-ones v row (fused softmax row-sum)
    CPV = _round_up(C + 1, 8)            # v segment rows: C channels + ones row
    NPROJ = 4 * RDS + CPV
    scale = float(RDP) ** -0.5           # matches torch: q.size(-1) ** -0.5

    sin_cm, cos_cm, R = _rope_tables_cm(HW, RDP)
    Rj = jnp.asarray(R)

    def w2d(w):                          # conv1x1 (O, I, 1, 1) -> (O, I) f32
        return w[:, :, 0, 0].astype(jnp.float32)

    wq = w2d(params["q_w"]) * scale      # softmax scale folded into q weights/bias
    bq = params["q_b"].astype(jnp.float32) * scale
    wk = w2d(params["k_w"])
    bk = params["k_b"].astype(jnp.float32)
    # Fold the output projection into v (one-time f32 fold, zero runtime cost):
    #   y = Wo (Wv x + bv)  ==  (Wo Wv) x + (Wo bv)
    wo = w2d(params["o_w"])
    wvo = wo @ w2d(params["v_w"])
    bvo = wo @ params["v_b"].astype(jnp.float32)

    def pad_rd(w, b):                    # (RD, C)/(RD,) -> (RDP, C)/(RDP,)
        wp = jnp.zeros((RDP, C), jnp.float32).at[:RD].set(w)
        bp = jnp.zeros((RDP,), jnp.float32).at[:RD].set(b)
        return wp, bp

    def pad_seg(w, b, rows):             # pad to (rows, CP)/(rows,), tile-aligned
        wp = jnp.zeros((rows, CP), jnp.float32).at[: w.shape[0], :C].set(w)
        bp = jnp.zeros((rows,), jnp.float32).at[: b.shape[0]].set(b)
        return wp, bp

    wq_p, bq_p = pad_rd(wq, bq)
    wk_p, bk_p = pad_rd(wk, bk)
    segs = [
        pad_seg(wq_p, bq_p, RDS),            # q
        pad_seg(Rj @ wq_p, Rj @ bq_p, RDS),  # q_rot (RoPE pair-swap pre-applied)
        pad_seg(wk_p, bk_p, RDS),            # k
        pad_seg(Rj @ wk_p, Rj @ bk_p, RDS),  # k_rot
    ]
    # v segment: rows 0..C-1 = Wo@Wv (bias Wo@bv); row ONES = all-ones via bias=1.
    wv_seg = jnp.zeros((CPV, CP), jnp.float32).at[:C, :C].set(wvo)
    bv_seg = jnp.zeros((CPV,), jnp.float32).at[:C].set(bvo).at[ONES].set(1.0)
    segs.append((wv_seg, bv_seg))

    w_all = jnp.concatenate([s[0] for s in segs], 0).astype(jnp.bfloat16)  # (NPROJ, CP)
    b_all = jnp.concatenate([s[1] for s in segs], 0)[:, None]              # (NPROJ, 1) f32

    # Pack sin/cos into one grid-invariant operand (tile-aligned segments).
    trig = jnp.zeros((2 * RDS, HW), jnp.float32)
    trig = trig.at[:RDP].set(jnp.asarray(sin_cm)).at[RDS:RDS + RDP].set(jnp.asarray(cos_cm))

    bo_col = jnp.zeros((CP, 1), jnp.float32).at[:C, 0].set(
        params["o_b"].astype(jnp.float32))

    # Channel-major slabs with zero-padded channels; no wrapper transpose.
    x_flat = jnp.pad(x_nchw.reshape(B, C, HW).astype(jnp.float32),
                     ((0, 0), (0, CP - C), (0, 0)))                        # (B, CP, HW)

    def kernel(x_ref, w_ref, b_ref, trig_ref, bo_ref, o_ref):
        x = x_ref[0]                                                # (CP, HW) f32
        # Fused projection, channel-major: (NPROJ, CP) @ (CP, HW) -> (NPROJ, HW).
        proj = jnp.dot(w_ref[...], x.astype(jnp.bfloat16),
                       preferred_element_type=jnp.float32) + b_ref[...]

        trig_v = trig_ref[...]
        sin, cos = trig_v[:RDS], trig_v[RDS:]                       # (RDS, HW) each
        q, qh = proj[0 * RDS:1 * RDS], proj[1 * RDS:2 * RDS]
        k, kh = proj[2 * RDS:3 * RDS], proj[3 * RDS:4 * RDS]
        v = proj[4 * RDS:]                                          # (CPV, HW)

        qr = (q * cos + qh * sin).astype(jnp.bfloat16)              # RoPE: lane-dense VPU
        kr = (k * cos + kh * sin).astype(jnp.bfloat16)              # (scale already folded)

        logits = jax.lax.dot_general(                               # (HW, HW) f32 = q.k
            qr, kr, (((0,), (0,)), ((), ())),
            preferred_element_type=jnp.float32)

        m = jnp.max(logits, axis=-1, keepdims=True)
        p = jnp.exp(logits - m).astype(jnp.bfloat16)                # unnormalized probs

        # (CPV, HWk) x (HWq, HWk)^T -> (CPV, HWq); row ONES holds the row-sums.
        out = jax.lax.dot_general(
            v.astype(jnp.bfloat16), p, (((1,), (1,)), ((), ())),
            preferred_element_type=jnp.float32)

        inv_s = pl.reciprocal(out[ONES:ONES + 1, :], approx=True)   # (1, HW)
        # Deferred softmax normalization + residual + output bias, lane-dense store.
        o_ref[0] = x + out[:CP, :] * inv_s + bo_ref[...]

    grid_spec = pltpu.PrefetchScalarGridSpec(
        num_scalar_prefetch=0,
        grid=(B,),
        in_specs=[
            pl.BlockSpec((1, CP, HW), lambda b: (b, 0, 0)),      # x slab (channel-major)
            pl.BlockSpec((NPROJ, CP), lambda b: (0, 0)),         # fused projection weights
            pl.BlockSpec((NPROJ, 1), lambda b: (0, 0)),          # fused biases
            pl.BlockSpec((2 * RDS, HW), lambda b: (0, 0)),       # packed sin|cos
            pl.BlockSpec((CP, 1), lambda b: (0, 0)),             # output bias
        ],
        out_specs=pl.BlockSpec((1, CP, HW), lambda b: (b, 0, 0)),
    )

    out_flat = pl.pallas_call(
        kernel,
        out_shape=jax.ShapeDtypeStruct((B, CP, HW), jnp.float32),
        grid_spec=grid_spec,
        compiler_params=pltpu.CompilerParams(dimension_semantics=("parallel",)),
    )(x_flat, w_all, b_all, trig, bo_col)

    # Drop zero-padded channels; reshape back to NCHW (no transpose needed).
    return out_flat[:, :C, :].reshape(B, C, H, W)


# ---------------------------------------------------------------------------
# Pure-JAX f32 reference (faithful to the PyTorch code, incl. strided interleave).
# ---------------------------------------------------------------------------
def reference(x, params):
    B, C, H, W = x.shape
    HW = H * W
    xf = x.reshape(B, C, HW).transpose(0, 2, 1)                  # (B, HW, C)

    def proj(w, b):
        return xf @ w[:, :, 0, 0].T + b

    def rope(t):
        b, hw, c = t.shape
        if c % 2 != 0:
            t = jnp.pad(t, ((0, 0), (0, 0), (0, 1)))
            c = c + 1
        pos = jnp.arange(hw, dtype=jnp.float32)[:, None]
        dim_t = jnp.arange(c // 2, dtype=jnp.float32)
        inv_freq = jnp.exp(-dim_t * math.log(10000.0) / (c // 2))
        pe = pos * inv_freq[None, :]
        sin, cos = jnp.sin(pe), jnp.cos(pe)
        te, to = t[..., 0::2], t[..., 1::2]
        out = jnp.zeros_like(t)
        out = out.at[..., 0::2].set(te * cos - to * sin)
        out = out.at[..., 1::2].set(to * cos + te * sin)
        return out

    q = rope(proj(params["q_w"], params["q_b"]))
    k = rope(proj(params["k_w"], params["k_b"]))
    v = proj(params["v_w"], params["v_b"])
    attn = jax.nn.softmax(
        jnp.einsum("bqd,bkd->bqk", q, k) * (q.shape[-1] ** -0.5), axis=-1)
    out = jnp.einsum("bqk,bkd->bqd", attn, v)                    # (B, HW, C)
    out_nchw = out.transpose(0, 2, 1).reshape(B, C, H, W)
    y = jnp.einsum("oc,bchw->bohw", params["o_w"][:, :, 0, 0], out_nchw)
    y = y + params["o_b"][None, :, None, None]
    return x + y


if __name__ == "__main__":
    B, C, H, W = 2, 4, 16, 16
    RD = max(1, C // 2)

    key = jax.random.PRNGKey(0)
    ks = jax.random.split(key, 9)
    # NOTE: the PyTorch __init__ zero-inits out_proj (identity at init); here
    # all params get small deterministic random values to exercise the kernel.
    params = {
        "q_w": 0.05 * jax.random.normal(ks[0], (RD, C, 1, 1), jnp.float32),
        "q_b": 0.05 * jax.random.normal(ks[1], (RD,), jnp.float32),
        "k_w": 0.05 * jax.random.normal(ks[2], (RD, C, 1, 1), jnp.float32),
        "k_b": 0.05 * jax.random.normal(ks[3], (RD,), jnp.float32),
        "v_w": 0.05 * jax.random.normal(ks[4], (C, C, 1, 1), jnp.float32),
        "v_b": 0.05 * jax.random.normal(ks[5], (C,), jnp.float32),
        "o_w": 0.05 * jax.random.normal(ks[6], (C, C, 1, 1), jnp.float32),
        "o_b": 0.05 * jax.random.normal(ks[7], (C,), jnp.float32),
    }
    x = jax.random.normal(ks[8], (B, C, H, W), jnp.float32)

    out = jax.block_until_ready(spatial_nonlocal_attention(x, params))

    ref = reference(x, params)
    # bf16 matmul operands + approx reciprocal => slightly looser tolerance.
    np.testing.assert_allclose(np.asarray(out), np.asarray(ref),
                               rtol=1e-2, atol=1e-2)
    print("KERNEL_OK")
</pallas_src>

<mosaic_0001>
module attributes {stable_mosaic.version = 11 : i64} {
  func.func @kernel(%arg0: i32, %arg1: memref<1x8x256xf32, #tpu.memory_space<vmem>>, %arg2: memref<40x8xbf16, #tpu.memory_space<vmem>>, %arg3: memref<40x1xf32, #tpu.memory_space<vmem>>, %arg4: memref<16x256xf32, #tpu.memory_space<vmem>>, %arg5: memref<8x1xf32, #tpu.memory_space<vmem>>, %arg6: memref<1x8x256xf32, #tpu.memory_space<vmem>>) attributes {dimension_semantics = [#tpu.dimension_semantics<parallel>], iteration_bounds = array<i64: 2>, scalar_prefetch = 0 : i64, scratch_operands = 0 : i64, tpu.core_type = #tpu.core_type<tc>, window_params = [{transform_indices = @transform_0, window_bounds = array<i64: 1, 8, 256>}, {pipeline_mode = #tpu.pipeline_mode<synchronous>, transform_indices = @transform_1, window_bounds = array<i64: 40, 8>}, {pipeline_mode = #tpu.pipeline_mode<synchronous>, transform_indices = @transform_2, window_bounds = array<i64: 40, 1>}, {pipeline_mode = #tpu.pipeline_mode<synchronous>, transform_indices = @transform_3, window_bounds = array<i64: 16, 256>}, {pipeline_mode = #tpu.pipeline_mode<synchronous>, transform_indices = @transform_4, window_bounds = array<i64: 8, 1>}, {transform_indices = @transform_5, window_bounds = array<i64: 1, 8, 256>}]} {
    %c0 = arith.constant 0 : index
    %c0_0 = arith.constant 0 : index
    %c0_1 = arith.constant 0 : index
    %0 = vector.load %arg1[%c0, %c0_0, %c0_1] : memref<1x8x256xf32, #tpu.memory_space<vmem>>, vector<1x8x256xf32>
    %1 = vector.shape_cast %0 : vector<1x8x256xf32> to vector<8x256xf32>
    %c0_2 = arith.constant 0 : index
    %c0_3 = arith.constant 0 : index
    %2 = vector.load %arg2[%c0_2, %c0_3] : memref<40x8xbf16, #tpu.memory_space<vmem>>, vector<40x8xbf16>
    %3 = arith.truncf %1 : vector<8x256xf32> to vector<8x256xbf16>
    %cst = arith.constant dense<0.000000e+00> : vector<40x256xf32>
    %4 = tpu.matmul %2, %3, %cst {dimension_numbers = #tpu.dot_dimension_numbers<[1], [0], [0], [1], [0, 0, 1, 1], [], []>} : vector<40x8xbf16>, vector<8x256xbf16>, vector<40x256xf32> -> vector<40x256xf32>
    %c0_4 = arith.constant 0 : index
    %c0_5 = arith.constant 0 : index
    %5 = vector.load %arg3[%c0_4, %c0_5] : memref<40x1xf32, #tpu.memory_space<vmem>>, vector<40x1xf32>
    %6 = vector.broadcast %5 : vector<40x1xf32> to vector<40x256xf32>
    %7 = arith.addf %4, %6 : vector<40x256xf32>
    %c0_6 = arith.constant 0 : index
    %c0_7 = arith.constant 0 : index
    %8 = vector.load %arg4[%c0_6, %c0_7] : memref<16x256xf32, #tpu.memory_space<vmem>>, vector<16x256xf32>
    %9 = vector.extract_strided_slice %8 {offsets = [0, 0], sizes = [8, 256], strides = [1, 1]} : vector<16x256xf32> to vector<8x256xf32>
    %10 = vector.extract_strided_slice %8 {offsets = [8, 0], sizes = [8, 256], strides = [1, 1]} : vector<16x256xf32> to vector<8x256xf32>
    %11 = vector.extract_strided_slice %7 {offsets = [0, 0], sizes = [8, 256], strides = [1, 1]} : vector<40x256xf32> to vector<8x256xf32>
    %12 = vector.extract_strided_slice %7 {offsets = [8, 0], sizes = [8, 256], strides = [1, 1]} : vector<40x256xf32> to vector<8x256xf32>
    %13 = vector.extract_strided_slice %7 {offsets = [16, 0], sizes = [8, 256], strides = [1, 1]} : vector<40x256xf32> to vector<8x256xf32>
    %14 = vector.extract_strided_slice %7 {offsets = [24, 0], sizes = [8, 256], strides = [1, 1]} : vector<40x256xf32> to vector<8x256xf32>
    %15 = vector.extract_strided_slice %7 {offsets = [32, 0], sizes = [8, 256], strides = [1, 1]} : vector<40x256xf32> to vector<8x256xf32>
    %16 = arith.mulf %11, %10 : vector<8x256xf32>
    %17 = arith.mulf %12, %9 : vector<8x256xf32>
    %18 = arith.addf %16, %17 : vector<8x256xf32>
    %19 = arith.truncf %18 : vector<8x256xf32> to vector<8x256xbf16>
    %20 = arith.mulf %13, %10 : vector<8x256xf32>
    %21 = arith.mulf %14, %9 : vector<8x256xf32>
    %22 = arith.addf %20, %21 : vector<8x256xf32>
    %23 = arith.truncf %22 : vector<8x256xf32> to vector<8x256xbf16>
    %cst_8 = arith.constant dense<0.000000e+00> : vector<256x256xf32>
    %24 = tpu.matmul %19, %23, %cst_8 {dimension_numbers = #tpu.dot_dimension_numbers<[0], [0], [1], [1], [0, 1, 1, 1], [], []>} : vector<8x256xbf16>, vector<8x256xbf16>, vector<256x256xf32> -> vector<256x256xf32>
    %cst_9 = arith.constant dense<0xFF800000> : vector<256xf32>
    %25 = vector.multi_reduction <maximumf>, %24, %cst_9 [1] : vector<256x256xf32> to vector<256xf32>
    %26 = vector.shape_cast %25 : vector<256xf32> to vector<256x1xf32>
    %27 = vector.broadcast %26 : vector<256x1xf32> to vector<256x256xf32>
    %28 = arith.subf %24, %27 : vector<256x256xf32>
    %29 = math.exp %28 : vector<256x256xf32>
    %30 = arith.truncf %29 : vector<256x256xf32> to vector<256x256xbf16>
    %31 = arith.truncf %15 : vector<8x256xf32> to vector<8x256xbf16>
    %cst_10 = arith.constant dense<0.000000e+00> : vector<8x256xf32>
    %32 = tpu.matmul %31, %30, %cst_10 {dimension_numbers = #tpu.dot_dimension_numbers<[1], [1], [0], [0], [0, 0, 1, 0], [], []>} : vector<8x256xbf16>, vector<256x256xbf16>, vector<8x256xf32> -> vector<8x256xf32>
    %33 = vector.extract_strided_slice %32 {offsets = [4, 0], sizes = [1, 256], strides = [1, 1]} : vector<8x256xf32> to vector<1x256xf32>
    %34 = tpu.reciprocal %33 {approx = true} : vector<1x256xf32> -> vector<1x256xf32>
    %35 = vector.broadcast %34 : vector<1x256xf32> to vector<8x256xf32>
    %36 = arith.mulf %32, %35 : vector<8x256xf32>
    %37 = arith.addf %1, %36 : vector<8x256xf32>
    %c0_11 = arith.constant 0 : index
    %c0_12 = arith.constant 0 : index
    %38 = vector.load %arg5[%c0_11, %c0_12] : memref<8x1xf32, #tpu.memory_space<vmem>>, vector<8x1xf32>
    %39 = vector.broadcast %38 : vector<8x1xf32> to vector<8x256xf32>
    %40 = arith.addf %37, %39 : vector<8x256xf32>
    %c0_13 = arith.constant 0 : index
    %c0_14 = arith.constant 0 : index
    %c0_15 = arith.constant 0 : index
    %41 = vector.load %arg6[%c0_13, %c0_14, %c0_15] : memref<1x8x256xf32, #tpu.memory_space<vmem>>, vector<1x8x256xf32>
    %42 = vector.shape_cast %41 : vector<1x8x256xf32> to vector<8x256xf32>
    %43 = vector.shape_cast %40 : vector<8x256xf32> to vector<1x8x256xf32>
    tpu.vector_store %arg6[%c0_13, %c0_14, %c0_15], %43 {strides = array<i32>} : memref<1x8x256xf32, #tpu.memory_space<vmem>>, vector<1x8x256xf32>,
    return
  }
  func.func @transform_0(%arg0: i32) -> (i32, i32, i32) {
    %c0_i32 = arith.constant 0 : i32
    %c0_i32_0 = arith.constant 0 : i32
    %c0_i32_1 = arith.constant 0 : i32
    return %arg0, %c0_i32, %c0_i32_0 : i32, i32, i32
  }
  func.func @transform_1(%arg0: i32) -> (i32, i32) {
    %c0_i32 = arith.constant 0 : i32
    %c0_i32_0 = arith.constant 0 : i32
    %c0_i32_1 = arith.constant 0 : i32
    return %c0_i32, %c0_i32_0 : i32, i32
  }
  func.func @transform_2(%arg0: i32) -> (i32, i32) {
    %c0_i32 = arith.constant 0 : i32
    %c0_i32_0 = arith.constant 0 : i32
    %c0_i32_1 = arith.constant 0 : i32
    return %c0_i32, %c0_i32_0 : i32, i32
  }
  func.func @transform_3(%arg0: i32) -> (i32, i32) {
    %c0_i32 = arith.constant 0 : i32
    %c0_i32_0 = arith.constant 0 : i32
    %c0_i32_1 = arith.constant 0 : i32
    return %c0_i32, %c0_i32_0 : i32, i32
  }
  func.func @transform_4(%arg0: i32) -> (i32, i32) {
    %c0_i32 = arith.constant 0 : i32
    %c0_i32_0 = arith.constant 0 : i32
    %c0_i32_1 = arith.constant 0 : i32
    return %c0_i32, %c0_i32_0 : i32, i32
  }
  func.func @transform_5(%arg0: i32) -> (i32, i32, i32) {
    %c0_i32 = arith.constant 0 : i32
    %c0_i32_0 = arith.constant 0 : i32
    %c0_i32_1 = arith.constant 0 : i32
    return %arg0, %c0_i32, %c0_i32_0 : i32, i32, i32
  }
}

</mosaic_0001>

<bundles_post_ra>
// kernel: tpu_custom_call.1
= control target key start
LH: loop header
LB: loop body
LE: loop exit
PB: predicated region body
PF: predicated region fallthrough
CT: control target
= control target key end

     0   :  { %10 = vsyncpa [#allocation3], 0  ;;  %s1878_s0 = inlined_call_operand.vmem [shape: f32[2,8,256], index: 0, kind: input, shape index: {}]   ;;  %s1879_s1 = inlined_call_operand.vmem [shape: bf16[40,8], index: 1, kind: input, shape index: {}]   ;;  %s1880_s2 = inlined_call_operand.vmem [shape: f32[40,1], index: 2, kind: input, shape index: {}]   ;;  %s1881_s3 = inlined_call_operand.vmem [shape: f32[16,256], index: 3, kind: input, shape index: {}]   ;;  %s1882_s4 = inlined_call_operand.vmem [shape: f32[8,1], index: 4, kind: input, shape index: {}]   ;;  %s1883_s5 = inlined_call_operand.hbm [shape: f32[2,8,256], index: 5, kind: output, shape index: {}]  }
   0x1   :  { %12 = vsyncpa [#allocation3 + $0x1], 0  ;;  %s1427_s18 = smov 0   ;;  %s1429_s19 = smov 0  }
   0x2   :  { %s1431_s20 = smov 0   ;;  %s1433_s21 = smov 0  }
   0x3 LB: > { %s1448_s22 = sadd.s32 4294967295, %s1393_s21   ;;  %s1114_s23 = sadd.s32 4294967294, %s1393_s21   ;;  %s1393_s21 = sphi %s1433_s21, %s1932_s21   ;;  %s1389_s20 = sphi %s1431_s20, %s1931_s20   ;;  %s1385_s19 = sphi %s1429_s19, %s1930_s19   ;;  %s1381_s18 = sphi %s1427_s18, %s1929_s18  }
   0x4   : > { %s1452_s24 = sadd.s32 1, %s1393_s21   ;;  %s135_s25 = sadd.s32 1, %s1389_s20 }
   0x5   : > { %s132_s26 = ssub.s32 %s1393_s21, %s1452_s24  ;;  %p145_p0 = scmp.ne.s32.totalorder %s1389_s20, %s1385_s19 }
   0x6   : > { %p133_p1 = scmp.eq.s32.totalorder %s132_s26, 0  ;;  %p146_p2 = scmp.eq.s32.totalorder %s1448_s22, 1 }
   0x7   : > { %p151_p3 = scmp.ne.s32.totalorder %s1385_s19, %s1381_s18  ;;  %p152_p4 = scmp.eq.s32.totalorder %s1114_s23, 1 }
   0x8   : > { %s1463_s27 = scalar_select %p133_p1, %s1389_s20, %s135_s25  }
   0x9   : > { %p1465_p5 = por %p146_p2, %p145_p0  ;;  %p1469_p6 = por %p152_p4, %p151_p3 }
   0xa   : > { %p1117_p7 = scmp.ge.s32.totalorder %s1393_s21, 1  ;;  %p190_p8 = scmp.lt.s32.totalorder %s1393_s21, 3 }
   0xc   : > { %p191_p9 = pnand %p1117_p7, %p190_p8 }
   0xe   : > { %194 = sbr.rel (%p191_p9) target bundleno = 1112 (0x458), region = 40 }
  0x15   : > { %p218_p10 = scmp.lt.s32.totalorder %s1448_s22, 1  ;;  %v1395_v0 = vmov 0   ;;  %v233_v1 = vld [vmem:[%s1880_s2] sm:$0xff]  ;;  %v234_v2 = vld [vmem:[%s1880_s2 + $0x8] sm:$0xff]  ;;  %v235_v3 = vld [vmem:[%s1880_s2 + $0x10] sm:$0xff]  ;;  %vm286_vm0 = vcmask 1043456  }
  0x16   : > { %325 = vmatprep.mubr.bf16.mxu0 %v1395_v0  ;;  %1192 = vset.pattern.permute.xlu0 %v1395_v0  ;;  %v236_v4 = vld [vmem:[%s1880_s2 + $0x18] sm:$0xff]  ;;  %v1194_v10 = vld [vmem:[%s1879_s1] sm:$0xff]   ;;  %vm276_vm1 = vcmask 64512   ;;  %v1195_v11 = vld [vmem:[%s1879_s1 + $0x8] sm:$0xff]   ;;  %s215_s30 = sand.u32 1, %s1385_s19  }
  0x17   : > { %s219_s7 = scalar_select %p218_p10, %s1448_s22, 1  ;;  %240 = vperm.xlu0 %1192, %v233_v1   ;;  %1193 = vset.pattern.permute.xlu1 %v1395_v0  ;;  %v356_v18 = vld [vmem:[%s1881_s3 + $0x10] sm:$0xff]  ;;  %v354_v21 = vld [vmem:[%s1881_s3] sm:$0xff]  ;;  %v357_v22 = vld [vmem:[%s1881_s3 + $0x18] sm:$0xff] }
  0x18   : > { %492 = vmatprep.mubr.bf16.mxu1 %v1395_v0  ;;  %250 = vperm.xlu1 %1193, %v235_v3   ;;  %v355_v25 = vld [vmem:[%s1881_s3 + $0x8] sm:$0xff]  ;;  %s1118_s6 = sshll.u32 %s215_s30, 4 }
  0x19   : > { %s1150_s12 = sshll.u32 %s219_s7, 4  ;;  %s1151_s7 = sshll.u32 %s1448_s22, 8 }
  0x1a   : > { %s1493_s15 = scalar_lea.vmem %s1878_s0, %s1150_s12  ;;  %s217_s8 = scalar_lea.vmem [#allocation2], %s1118_s6 }
  0x1b   : > { %v225_v5 = vld [vmem:[%s1493_s15 + $0x8] sm:$0xff]  ;;  %v224_v6 = vld [vmem:[%s1493_s15] sm:$0xff]  ;;  %245 = vperm.xlu0 %1192, %v234_v2   ;;  %s1055_s9 = sshll.u32 %s217_s8, 4  ;;  %s1836_s12 = scalar_lea.hbm %s1883_s5, %s1151_s7  ;;  %s1838_s9 = int_to_ptr.vmem [resolvable:$true] %s1055_s9 }
  0x1c   : > { %v232_v7 = vpack.c.bf16 %v225_v5, %v225_v5  ;;  %v231_v8 = vpack.c.bf16 %v224_v6, %v224_v6  ;;  %255 = vperm.xlu1 %1193, %v236_v4   ;;  %v1196_v6 = vld [vmem:[%s1879_s1 + $0x10] ss:$0 sps:$4 sm:$0xff]   ;;  %s1041_s22 = scalar_lea.sflag [#allocation3], %s215_s30  ;;  %s1331_s13 = scalar_lea.vmem %s1838_s9, 256 }
  0x1d   : > { %p1332_p11 = scmp.ne.s32.totalorder %s1838_s9, %s1331_s13 }
  0x1e   : > { %1124 = vmatprep.subr.msk.bf16.mxu0 %vm286_vm0, %v232_v7  ;;  %v288_v9 = vsel %vm286_vm0, %v231_v8, 0 }
  0x1f   : > { %294 = vmatpush1.bf16.msra.mxu0 %v288_v9  ;;  %p1333_p12 = pnand %p1332_p11, %p1465_p5 }
  0x21   : > { %p1334_p13 = pneg %p1333_p12 }
  0x22   : > { %1125 = vmatmul.mubr.msk.bf16.vlgmr.msra.gmra.mrb[0].mxu0 %vm276_vm1, %v1194_v10 }
  0x23   : > { %335 = vmatprep.mubr.bf16.mxu0 %v1395_v0 }
  0x2a   : > { %1126 = vmatmul.mubr.msk.bf16.gmra.mrb[4].mxu0 %vm276_vm1, %v1195_v11 }
  0x2b   : > { %345 = vmatprep.mubr.bf16.mxu0 %v1395_v0 }
  0x32   : > { %1127 = vmatmul.mubr.msk.bf16.gmra.mrb[8].mxu0 %vm276_vm1, %v1196_v6 }
  0x96   : > { %v241_v12 = vpop.permute.xlu0 %240 }
  0x97   : > { %v251_v16 = vpop.permute.xlu1 %250 }
  0x9a   : > { %v246_v17 = vpop.permute.xlu0 %245 }
  0x9b   : > { %v256_v34 = vpop.permute.xlu1 %255 }
  0xf5   : > { %v327_v13 = vpop.f32.mrb[0].mxu0 }
  0xf6   : > { %v328_v14 = vadd.f32 %v327_v13, %v241_v12  ;;  %v329_v15 = vpop.f32.mrb[1].mxu0 }
  0xf7   : > { %v330_v19 = vadd.f32 %v329_v15, %v241_v12  ;;  %v331_v20 = vpop.f32.mrb[2].mxu0 }
  0xf8   : > { %v332_v23 = vadd.f32 %v331_v20, %v246_v17  ;;  %v333_v24 = vpop.f32.mrb[3].mxu0  ;;  %v358_v27 = vmul.f32 %v356_v18, %v328_v14 }
  0xf9   : > { %v334_v26 = vadd.f32 %v333_v24, %v246_v17  ;;  %v359_v29 = vmul.f32 %v357_v22, %v330_v19 }
  0xfa   : > { %v360_v28 = vmul.f32 %v354_v21, %v332_v23 }
  0xfb   : > { %v361_v30 = vmul.f32 %v355_v25, %v334_v26 }
  0xfc   : > { %v362_v31 = vadd.f32 %v360_v28, %v358_v27 }
  0xfd   : > { %v363_v32 = vadd.f32 %v361_v30, %v359_v29  ;;  %v337_v33 = vpop.f32.mrb[4].mxu0 }
  0xfe   : > { %v364_v35 = vpack.c.bf16 %v362_v31, %v362_v31  ;;  %v338_v36 = vadd.f32 %v337_v33, %v251_v16  ;;  %v339_v37 = vpop.f32.mrb[5].mxu0 }
  0xff   : > { %v365_v38 = vpack.c.bf16 %v363_v32, %v363_v32  ;;  %v340_v39 = vadd.f32 %v339_v37, %v251_v16  ;;  %v341_v40 = vpop.f32.mrb[6].mxu0 }
 0x100   : > { %374 = vxpose.xlu0.c.b16.start.end [1/1] (short) %v364_v35, 128  ;;  %v366_v41 = vmul.f32 %v356_v18, %v338_v36  ;;  %v342_v42 = vadd.f32 %v341_v40, %v256_v34  ;;  %v343_v43 = vpop.f32.mrb[7].mxu0 }
 0x101   : > { %390 = vxpose.xlu1.c.b16.start.end [1/1] (short) %v365_v38, 128  ;;  %v367_v44 = vmul.f32 %v357_v22, %v340_v39  ;;  %v344_v45 = vadd.f32 %v343_v43, %v256_v34 }
 0x102   : > { %v368_v46 = vmul.f32 %v354_v21, %v342_v42 }
 0x103   : > { %v369_v47 = vmul.f32 %v355_v25, %v344_v45 }
 0x104   : > { %v370_v48 = vadd.f32 %v368_v46, %v366_v41 }
 0x105   : > { %v371_v49 = vadd.f32 %v369_v47, %v367_v44 }
 0x106   : > { %v372_v50 = vpack.c.bf16 %v370_v48, %v370_v48 }
 0x107   : > { %v373_v51 = vpack.c.bf16 %v371_v49, %v371_v49 }
 0x108   : > { %v455_v52 = vsel %vm286_vm0, %v372_v50, 0 }
 0x109   : > { %1128 = vmatprep.subr.msk.bf16.mxu1 %vm286_vm0, %v373_v51 }
 0x10a   : > { %461 = vmatpush1.bf16.msra.mxu1 %v455_v52 }
 0x166   : > { %v382_v53 = vpop.trf.xlu0 }
 0x167   : > { %1129 = vmatmul.mubr.msk.bf16.vlgmr.msra.gmra.mrb[0].mxu1 %vm276_vm1, %v382_v53  ;;  %v398_v61 = vpop.trf.xlu1 }
 0x168   : > { %502 = vmatprep.mubr.bf16.mxu1 %v1395_v0 }
 0x16a   : > { %v383_v54 = vpop.trf.xlu0 }
 0x16b   : > { %v399_v62 = vpop.trf.xlu1 }
 0x16e   : > { %v384_v55 = vpop.trf.xlu0 }
 0x16f   : > { %1130 = vmatmul.mubr.msk.bf16.gmra.mrb[4].mxu1 %vm276_vm1, %v383_v54  ;;  %v400_v63 = vpop.trf.xlu1 }
 0x170   : > { %512 = vmatprep.mubr.bf16.mxu1 %v1395_v0 }
 0x172   : > { %v385_v56 = vpop.trf.xlu0 }
 0x173   : > { %v401_v1 = vpop.trf.xlu1 }
 0x176   : > { %v386_v57 = vpop.trf.xlu0 }
 0x177   : > { %1131 = vmatmul.mubr.msk.bf16.gmra.mrb[8].mxu1 %vm276_vm1, %v384_v55  ;;  %v402_v2 = vpop.trf.xlu1 }
 0x178   : > { %522 = vmatprep.mubr.bf16.mxu1 %v1395_v0 }
 0x17a   : > { %v387_v58 = vpop.trf.xlu0 }
 0x17b   : > { %v403_v3 = vpop.trf.xlu1 }
 0x17e   : > { %v388_v59 = vpop.trf.xlu0 }
 0x17f   : > { %1132 = vmatmul.mubr.msk.bf16.gmra.mrb[12].mxu1 %vm276_vm1, %v385_v56  ;;  %v404_v4 = vpop.trf.xlu1 }
 0x180   : > { %532 = vmatprep.mubr.bf16.mxu1 %v1395_v0 }
 0x182   : > { %v389_v60 = vpop.trf.xlu0 }
 0x183   : > { %v405_v5 = vpop.trf.xlu1 }
 0x187   : > { %1133 = vmatmul.mubr.msk.bf16.gmra.mrb[16].mxu1 %vm276_vm1, %v386_v57 }
 0x188   : > { %542 = vmatprep.mubr.bf16.mxu1 %v1395_v0 }
 0x18f   : > { %1134 = vmatmul.mubr.msk.bf16.gmra.mrb[20].mxu1 %vm276_vm1, %v387_v58 }
 0x190   : > { %552 = vmatprep.mubr.bf16.mxu1 %v1395_v0 }
 0x197   : > { %1135 = vmatmul.mubr.msk.bf16.gmra.mrb[24].mxu1 %vm276_vm1, %v388_v59 }
 0x198   : > { %562 = vmatprep.mubr.bf16.mxu1 %v1395_v0 }
 0x19f   : > { %1136 = vmatmul.mubr.msk.bf16.gmra.mrb[28].mxu1 %vm276_vm1, %v389_v60 }
 0x1a0   : > { %572 = vmatprep.mubr.bf16.mxu1 %v1395_v0 }
 0x1a7   : > { %1137 = vmatmul.mubr.msk.bf16.gmra.mrb[32].mxu1 %vm276_vm1, %v398_v61 }
 0x1a8   : > { %582 = vmatprep.mubr.bf16.mxu1 %v1395_v0 }
 0x1af   : > { %1138 = vmatmul.mubr.msk.bf16.gmra.mrb[36].mxu1 %vm276_vm1, %v399_v62 }
 0x1b0   : > { %592 = vmatprep.mubr.bf16.mxu1 %v1395_v0 }
 0x1b7   : > { %1139 = vmatmul.mubr.msk.bf16.gmra.mrb[40].mxu1 %vm276_vm1, %v400_v63 }
 0x1b8   : > { %602 = vmatprep.mubr.bf16.mxu1 %v1395_v0 }
 0x1bf   : > { %1140 = vmatmul.mubr.msk.bf16.gmra.mrb[44].mxu1 %vm276_vm1, %v401_v1 }
 0x1c0   : > { %612 = vmatprep.mubr.bf16.mxu1 %v1395_v0 }
 0x1c7   : > { %1141 = vmatmul.mubr.msk.bf16.gmra.mrb[48].mxu1 %vm276_vm1, %v402_v2 }
 0x1c8   : > { %622 = vmatprep.mubr.bf16.mxu1 %v1395_v0 }
 0x1cf   : > { %1142 = vmatmul.mubr.msk.bf16.gmra.mrb[52].mxu1 %vm276_vm1, %v403_v3 }
 0x1d0   : > { %632 = vmatprep.mubr.bf16.mxu1 %v1395_v0 }
 0x1d7   : > { %1143 = vmatmul.mubr.msk.bf16.gmra.mrb[56].mxu1 %vm276_vm1, %v404_v4 }
 0x1d8   : > { %642 = vmatprep.mubr.bf16.mxu1 %v1395_v0 }
 0x1df   : > { %1144 = vmatmul.mubr.msk.bf16.gmra.mrb[60].mxu1 %vm276_vm1, %v405_v5 }
 0x23a   : > { %v1561_v7 = vpop.f32.mrb[0].mxu1 }
 0x23b   : > { %v1563_v8 = vpop.f32.mrb[1].mxu1 }
 0x23c   : > { %v1565_v9 = vpop.f32.mrb[2].mxu1  ;;  %v653_v10 = vmax.f32 %v1561_v7, %v1563_v8 }
 0x23d   : > { %v1569_v11 = vpop.f32.mrb[3].mxu1 }
 0x23e   : > { %654 = vmax.xlane.f32.xlu0 %v653_v10  ;;  %v656_v0 = vmax.f32 %v1565_v9, %v1569_v11 }
 0x240   : > { %657 = vmax.xlane.f32.xlu1 %v656_v0 }
 0x242   : > { %v1573_v12 = vpop.f32.mrb[4].mxu1 }
 0x243   : > { %v1575_v13 = vpop.f32.mrb[5].mxu1 }
 0x244   : > { %v1577_v14 = vpop.f32.mrb[6].mxu1  ;;  %v659_v15 = vmax.f32 %v1573_v12, %v1575_v13 }
 0x245   : > { %v1581_v16 = vpop.f32.mrb[7].mxu1 }
 0x246   : > { %660 = vmax.xlane.f32.xlu0 %v659_v15  ;;  %v662_v17 = vmax.f32 %v1577_v14, %v1581_v16 }
 0x24a   : > { %663 = vmax.xlane.f32.xlu0 %v662_v17  ;;  %v1585_v18 = vpop.f32.mrb[8].mxu1 }
 0x24b   : > { %v1587_v19 = vpop.f32.mrb[9].mxu1 }
 0x24c   : > { %v1589_v20 = vpop.f32.mrb[10].mxu1  ;;  %v665_v21 = vmax.f32 %v1585_v18, %v1587_v19 }
 0x24d   : > { %v1593_v22 = vpop.f32.mrb[11].mxu1 }
 0x24e   : > { %666 = vmax.xlane.f32.xlu1 %v665_v21  ;;  %v668_v23 = vmax.f32 %v1589_v20, %v1593_v22 }
 0x250   : > { %669 = vmax.xlane.f32.xlu0 %v668_v23 }
 0x252   : > { %v1597_v24 = vpop.f32.mrb[12].mxu1 }
 0x253   : > { %v1599_v25 = vpop.f32.mrb[13].mxu1 }
 0x254   : > { %v1601_v26 = vpop.f32.mrb[14].mxu1  ;;  %v671_v27 = vmax.f32 %v1597_v24, %v1599_v25 }
 0x255   : > { %v1605_v28 = vpop.f32.mrb[15].mxu1 }
 0x256   : > { %672 = vmax.xlane.f32.xlu1 %v671_v27  ;;  %v674_v29 = vmax.f32 %v1601_v26, %v1605_v28 }
 0x258   : > { %675 = vmax.xlane.f32.xlu0 %v674_v29 }
 0x25a   : > { %v1609_v30 = vpop.f32.mrb[16].mxu1 }
 0x25b   : > { %v1611_v31 = vpop.f32.mrb[17].mxu1 }
 0x25c   : > { %v1613_v32 = vpop.f32.mrb[18].mxu1  ;;  %v677_v33 = vmax.f32 %v1609_v30, %v1611_v31 }
 0x25d   : > { %v1617_v34 = vpop.f32.mrb[19].mxu1 }
 0x25e   : > { %678 = vmax.xlane.f32.xlu1 %v677_v33  ;;  %v680_v35 = vmax.f32 %v1613_v32, %v1617_v34 }
 0x260   : > { %681 = vmax.xlane.f32.xlu0 %v680_v35 }
 0x262   : > { %v1621_v36 = vpop.f32.mrb[20].mxu1 }
 0x263   : > { %v1623_v37 = vpop.f32.mrb[21].mxu1 }
 0x264   : > { %v1625_v38 = vpop.f32.mrb[22].mxu1  ;;  %v683_v39 = vmax.f32 %v1621_v36, %v1623_v37 }
 0x265   : > { %v1629_v40 = vpop.f32.mrb[23].mxu1 }
 0x266   : > { %684 = vmax.xlane.f32.xlu1 %v683_v39  ;;  %v686_v41 = vmax.f32 %v1625_v38, %v1629_v40 }
 0x268   : > { %687 = vmax.xlane.f32.xlu0 %v686_v41 }
 0x26a   : > { %v1633_v42 = vpop.f32.mrb[24].mxu1 }
 0x26b   : > { %v1635_v43 = vpop.f32.mrb[25].mxu1 }
 0x26c   : > { %v1637_v44 = vpop.f32.mrb[26].mxu1  ;;  %v689_v45 = vmax.f32 %v1633_v42, %v1635_v43 }
 0x26d   : > { %v1641_v46 = vpop.f32.mrb[27].mxu1 }
 0x26e   : > { %690 = vmax.xlane.f32.xlu1 %v689_v45  ;;  %v692_v47 = vmax.f32 %v1637_v44, %v1641_v46 }
 0x270   : > { %693 = vmax.xlane.f32.xlu0 %v692_v47 }
 0x272   : > { %v1645_v48 = vpop.f32.mrb[28].mxu1 }
 0x273   : > { %v1647_v49 = vpop.f32.mrb[29].mxu1 }
 0x274   : > { %v1649_v50 = vpop.f32.mrb[30].mxu1  ;;  %v695_v51 = vmax.f32 %v1645_v48, %v1647_v49 }
 0x275   : > { %v1653_v52 = vpop.f32.mrb[31].mxu1 }
 0x276   : > { %696 = vmax.xlane.f32.xlu1 %v695_v51  ;;  %v698_v53 = vmax.f32 %v1649_v50, %v1653_v52 }
 0x278   : > { %699 = vmax.xlane.f32.xlu0 %v698_v53 }
 0x27a   : > { %v1657_v54 = vpop.f32.mrb[32].mxu1 }
 0x27b   : > { %v1659_v55 = vpop.f32.mrb[33].mxu1 }
 0x27c   : > { %v1661_v56 = vpop.f32.mrb[34].mxu1  ;;  %v701_v57 = vmax.f32 %v1657_v54, %v1659_v55 }
 0x27d   : > { %v1665_v58 = vpop.f32.mrb[35].mxu1 }
 0x27e   : > { %702 = vmax.xlane.f32.xlu1 %v701_v57  ;;  %v704_v59 = vmax.f32 %v1661_v56, %v1665_v58 }
 0x280   : > { %705 = vmax.xlane.f32.xlu0 %v704_v59 }
 0x282   : > { %v1669_v60 = vpop.f32.mrb[36].mxu1 }
 0x283   : > { %v1671_v61 = vpop.f32.mrb[37].mxu1 }
 0x284   : > { %v1673_v62 = vpop.f32.mrb[38].mxu1  ;;  %v707_v63 = vmax.f32 %v1669_v60, %v1671_v61 }
 0x285   : > { %v1677_v1 = vpop.f32.mrb[39].mxu1 }
 0x286   : > { %708 = vmax.xlane.f32.xlu1 %v707_v63  ;;  %v710_v2 = vmax.f32 %v1673_v62, %v1677_v1 }
 0x288   : > { %711 = vmax.xlane.f32.xlu0 %v710_v2 }
 0x28a   : > { %v1681_v3 = vpop.f32.mrb[40].mxu1 }
 0x28b   : > { %v1683_v4 = vpop.f32.mrb[41].mxu1 }
 0x28c   : > { %v1685_v5 = vpop.f32.mrb[42].mxu1  ;;  %v713_v6 = vmax.f32 %v1681_v3, %v1683_v4 }
 0x28d   : > { %v1689_v10 = vpop.f32.mrb[43].mxu1 }
 0x28e   : > { %714 = vmax.xlane.f32.xlu1 %v713_v6  ;;  %v716_v0 = vmax.f32 %v1685_v5, %v1689_v10 }
 0x290   : > { %717 = vmax.xlane.f32.xlu0 %v716_v0 }
 0x292   : > { %v1693_v15 = vpop.f32.mrb[44].mxu1 }
 0x293   : > { %v1695_v17 = vpop.f32.mrb[45].mxu1 }
 0x294   : > { %v1697_v21 = vpop.f32.mrb[46].mxu1  ;;  %v719_v23 = vmax.f32 %v1693_v15, %v1695_v17 }
 0x295   : > { %v1701_v27 = vpop.f32.mrb[47].mxu1 }
 0x296   : > { %720 = vmax.xlane.f32.xlu1 %v719_v23  ;;  %v722_v29 = vmax.f32 %v1697_v21, %v1701_v27 }
 0x298   : > { %723 = vmax.xlane.f32.xlu0 %v722_v29 }
 0x29a   : > { %v1705_v33 = vpop.f32.mrb[48].mxu1 }
 0x29b   : > { %v1707_v35 = vpop.f32.mrb[49].mxu1 }
 0x29c   : > { %v1709_v39 = vpop.f32.mrb[50].mxu1  ;;  %v725_v41 = vmax.f32 %v1705_v33, %v1707_v35 }
 0x29d   : > { %v1713_v45 = vpop.f32.mrb[51].mxu1 }
 0x29e   : > { %1899 = vst [vmem:[#allocation5_spill] sm:$0xff] %v1713_v45  ;;  %726 = vmax.xlane.f32.xlu1 %v725_v41  ;;  %v728_v47 = vmax.f32 %v1709_v39, %v1713_v45 }
 0x2a0   : > { %729 = vmax.xlane.f32.xlu0 %v728_v47 }
 0x2a2   : > { %v1717_v51 = vpop.f32.mrb[52].mxu1 }
 0x2a3   : > { %1900 = vst [vmem:[#allocation6_spill] sm:$0xff] %v1717_v51  ;;  %v1719_v53 = vpop.f32.mrb[53].mxu1 }
 0x2a4   : > { %1901 = vst [vmem:[#allocation7_spill] sm:$0xff] %v1719_v53  ;;  %v1721_v57 = vpop.f32.mrb[54].mxu1  ;;  %v731_v59 = vmax.f32 %v1717_v51, %v1719_v53 }
 0x2a5   : > { %1902 = vst [vmem:[#allocation8_spill] sm:$0xff] %v1721_v57  ;;  %v1725_v63 = vpop.f32.mrb[55].mxu1 }
 0x2a6   : > { %1903 = vst [vmem:[#allocation9_spill] sm:$0xff] %v1725_v63  ;;  %732 = vmax.xlane.f32.xlu1 %v731_v59  ;;  %v734_v2 = vmax.f32 %v1721_v57, %v1725_v63 }
 0x2a8   : > { %735 = vmax.xlane.f32.xlu0 %v734_v2 }
 0x2aa   : > { %v1729_v6 = vpop.f32.mrb[56].mxu1 }
 0x2ab   : > { %1904 = vst [vmem:[#allocation10_spill] sm:$0xff] %v1729_v6  ;;  %v1731_v0 = vpop.f32.mrb[57].mxu1 }
 0x2ac   : > { %1905 = vst [vmem:[#allocation11_spill] sm:$0xff] %v1731_v0  ;;  %v1733_v23 = vpop.f32.mrb[58].mxu1  ;;  %v737_v29 = vmax.f32 %v1729_v6, %v1731_v0 }
 0x2ad   : > { %1906 = vst [vmem:[#allocation12_spill] sm:$0xff] %v1733_v23  ;;  %v1737_v41 = vpop.f32.mrb[59].mxu1 }
 0x2ae   : > { %1907 = vst [vmem:[#allocation13_spill] sm:$0xff] %v1737_v41  ;;  %738 = vmax.xlane.f32.xlu1 %v737_v29  ;;  %v740_v47 = vmax.f32 %v1733_v23, %v1737_v41  ;;  %v237_v29 = vld [vmem:[%s1880_s2 + $0x20] sm:$0xff] }
 0x2b0   : > { %741 = vmax.xlane.f32.xlu0 %v740_v47  ;;  %v1756_v47 = vpop.f32.mrb[8].mxu0 }
 0x2b1   : > { %1912 = vst [vmem:[#allocation18_spill] sm:$0xff] %v1756_v47  ;;  %v1758_v41 = vpop.f32.mrb[9].mxu0 }
 0x2b2   : > { %v1741_v59 = vpop.f32.mrb[60].mxu1  ;;  %1913 = vst [vmem:[#allocation19_spill] sm:$0xff] %v1758_v41  ;;  %v351_v23 = vpop.f32.mrb[10].mxu0 }
 0x2b3   : > { %1908 = vst [vmem:[#allocation14_spill] sm:$0xff] %v1741_v59  ;;  %v1743_v63 = vpop.f32.mrb[61].mxu1 }
 0x2b4   : > { %1909 = vst [vmem:[#allocation15_spill] sm:$0xff] %v1743_v63  ;;  %v1745_v2 = vpop.f32.mrb[62].mxu1  ;;  %v743_v57 = vmax.f32 %v1741_v59, %v1743_v63  ;;  %v1030_v63 = vld [vmem:[%s1882_s4] sm:$0xff]  ;;  %v352_v59 = vpop.f32.mrb[11].mxu0 }
 0x2b5   : > { %1910 = vst [vmem:[#allocation16_spill] sm:$0xff] %v1745_v2  ;;  %v1749_v53 = vpop.f32.mrb[63].mxu1 }
 0x2b6   : > { %1911 = vst [vmem:[#allocation17_spill] sm:$0xff] %v1749_v53  ;;  %v746_v0 = vmax.f32 %v1745_v2, %v1749_v53  ;;  %744 = vmax.xlane.f32.xlu1 %v743_v57 }
 0x2b8   : > { %747 = vmax.xlane.f32.xlu0 %v746_v0 }
 0x2c7   : > { %260 = vperm.xlu1 %1193, %v237_v29  }
 0x2cb   : > { %v655_v6 = vpop.xlane.xlu0 %654 }
 0x2cc   : > { %v749_v53 = vsub.f32 %v1561_v7, %v655_v6  ;;  %v750_v57 = vsub.f32 %v1563_v8, %v655_v6 }
 0x2cd   : > { %v658_v0 = vpop.xlane.xlu1 %657 }
 0x2ce   : > { %v813_v2 = vmul.f32 1.442695, %v749_v53  ;;  %v751_v51 = vsub.f32 %v1565_v9, %v658_v0  ;;  %v752_v29 = vsub.f32 %v1569_v11, %v658_v0  ;;  %1033 = vperm.xlu0 %1192, %v1030_v63   ;;  %v815_v47 = vmul.f32 1.442695, %v750_v57 }
 0x2d0   : > { %v817_v41 = vmul.f32 1.442695, %v751_v51  ;;  %v819_v23 = vmul.f32 1.442695, %v752_v29  ;;  %1197 = vpow2.f32 %v813_v2 }
 0x2d2   : > { %1199 = vpow2.f32 %v817_v41 }
 0x2d3   : > { %1201 = vpow2.f32 %v819_v23  ;;  %v661_v45 = vpop.xlane.xlu0 %660 }
 0x2d4   : > { %1203 = vpow2.f32 %v815_v47  ;;  %v753_v59 = vsub.f32 %v1573_v12, %v661_v45  ;;  %v754_v7 = vsub.f32 %v1575_v13, %v661_v45 }
 0x2d6   : > { %v821_v8 = vmul.f32 1.442695, %v753_v59  ;;  %v823_v6 = vmul.f32 1.442695, %v754_v7 }
 0x2d7   : > { %v664_v53 = vpop.xlane.xlu0 %663 }
 0x2d8   : > { %v755_v9 = vsub.f32 %v1577_v14, %v664_v53  ;;  %v756_v11 = vsub.f32 %v1581_v16, %v664_v53  ;;  %1205 = vpow2.f32 %v821_v8 }
 0x2d9   : > { %1207 = vpow2.f32 %v823_v6 }
 0x2da   : > { %v825_v63 = vmul.f32 1.442695, %v755_v9  ;;  %v827_v51 = vmul.f32 1.442695, %v756_v11  ;;  %v1198_v57 = vpop.eup %1197 }
 0x2db   : > { %v667_v41 = vpop.xlane.xlu1 %666 }
 0x2dc   : > { %v1200_v2 = vpop.eup %1199  ;;  %1209 = vpow2.f32 %v825_v63  ;;  %v757_v47 = vsub.f32 %v1585_v18, %v667_v41  ;;  %v758_v12 = vsub.f32 %v1587_v19, %v667_v41 }
 0x2dd   : > { %v1202_v13 = vpop.eup %1201  ;;  %1211 = vpow2.f32 %v827_v51  ;;  %v670_v45 = vpop.xlane.xlu0 %669  ;;  %v941_v0 = vpack.c.bf16 %v1200_v2, %v1198_v57 }
 0x2de   : > { %v1204_v29 = vpop.eup %1203  ;;  %v829_v14 = vmul.f32 1.442695, %v757_v47  ;;  %v759_v16 = vsub.f32 %v1589_v20, %v670_v45  ;;  %v760_v23 = vsub.f32 %v1593_v22, %v670_v45  ;;  %v831_v7 = vmul.f32 1.442695, %v758_v12 }
 0x2df   : > { %v942_v59 = vpack.c.bf16 %v1202_v13, %v1204_v29 }
 0x2e0   : > { %v833_v8 = vmul.f32 1.442695, %v759_v16  ;;  %v835_v6 = vmul.f32 1.442695, %v760_v23  ;;  %1213 = vpow2.f32 %v829_v14 }
 0x2e1   : > { %975 = vmatprep.subr.bf16.mxu0 %v942_v59 }
 0x2e2   : > { %1215 = vpow2.f32 %v833_v8  ;;  %976 = vmatpush1.bf16.xpose.msra.mxu0 %v941_v0  ;;  %v1206_v19 = vpop.eup %1205 }
 0x2e3   : > { %1217 = vpow2.f32 %v835_v6  ;;  %v673_v18 = vpop.xlane.xlu1 %672  ;;  %v1208_v11 = vpop.eup %1207 }
 0x2e4   : > { %1219 = vpow2.f32 %v831_v7  ;;  %v761_v53 = vsub.f32 %v1597_v24, %v673_v18  ;;  %v762_v9 = vsub.f32 %v1599_v25, %v673_v18 }
 0x2e5   : > { %v676_v20 = vpop.xlane.xlu0 %675 }
 0x2e6   : > { %v1210_v63 = vpop.eup %1209  ;;  %v837_v22 = vmul.f32 1.442695, %v761_v53  ;;  %v763_v51 = vsub.f32 %v1601_v26, %v676_v20  ;;  %v764_v57 = vsub.f32 %v1605_v28, %v676_v20  ;;  %v839_v47 = vmul.f32 1.442695, %v762_v9 }
 0x2e7   : > { %v1212_v41 = vpop.eup %1211  ;;  %v943_v2 = vpack.c.bf16 %v1210_v63, %v1206_v19 }
 0x2e8   : > { %v841_v12 = vmul.f32 1.442695, %v763_v51  ;;  %v843_v13 = vmul.f32 1.442695, %v764_v57  ;;  %v944_v45 = vpack.c.bf16 %v1212_v41, %v1208_v11  ;;  %1221 = vpow2.f32 %v837_v22 }
 0x2ea   : > { %1223 = vpow2.f32 %v841_v12  ;;  %977 = vmatprep.subr.bf16.mxu0 %v944_v45  ;;  %v1214_v24 = vpop.eup %1213 }
 0x2eb   : > { %1225 = vpow2.f32 %v843_v13  ;;  %978 = vmatpush1.bf16.xpose.msra.mxu0 %v943_v2  ;;  %v679_v25 = vpop.xlane.xlu1 %678 }
 0x2ec   : > { %v1216_v0 = vpop.eup %1215  ;;  %1227 = vpow2.f32 %v839_v47  ;;  %v765_v29 = vsub.f32 %v1609_v30, %v679_v25  ;;  %v766_v26 = vsub.f32 %v1611_v31, %v679_v25 }
 0x2ed   : > { %v1218_v28 = vpop.eup %1217  ;;  %v682_v14 = vpop.xlane.xlu0 %681  ;;  %v945_v16 = vpack.c.bf16 %v1216_v0, %v1214_v24 }
 0x2ee   : > { %v1220_v23 = vpop.eup %1219  ;;  %v845_v59 = vmul.f32 1.442695, %v765_v29  ;;  %v767_v7 = vsub.f32 %v1613_v32, %v682_v14  ;;  %v768_v8 = vsub.f32 %v1617_v34, %v682_v14  ;;  %v847_v18 = vmul.f32 1.442695, %v766_v26 }
 0x2ef   : > { %v946_v6 = vpack.c.bf16 %v1218_v28, %v1220_v23 }
 0x2f0   : > { %v849_v19 = vmul.f32 1.442695, %v767_v7  ;;  %v851_v53 = vmul.f32 1.442695, %v768_v8  ;;  %1229 = vpow2.f32 %v845_v59 }
 0x2f1   : > { %979 = vmatprep.subr.bf16.mxu0 %v946_v6 }
 0x2f2   : > { %1231 = vpow2.f32 %v849_v19  ;;  %v1222_v9 = vpop.eup %1221 }
 0x2f3   : > { %1233 = vpow2.f32 %v851_v53  ;;  %980 = vmatpush1.bf16.xpose.msra.mxu0 %v945_v16  ;;  %v685_v30 = vpop.xlane.xlu1 %684 }
 0x2f4   : > { %v1224_v31 = vpop.eup %1223  ;;  %1235 = vpow2.f32 %v847_v18  ;;  %v769_v11 = vsub.f32 %v1621_v36, %v685_v30  ;;  %v770_v20 = vsub.f32 %v1623_v37, %v685_v30 }
 0x2f5   : > { %v1226_v32 = vpop.eup %1225  ;;  %v688_v63 = vpop.xlane.xlu0 %687  ;;  %v947_v34 = vpack.c.bf16 %v1224_v31, %v1222_v9 }
 0x2f6   : > { %v1228_v22 = vpop.eup %1227  ;;  %v853_v51 = vmul.f32 1.442695, %v769_v11  ;;  %v771_v57 = vsub.f32 %v1625_v38, %v688_v63  ;;  %v772_v41 = vsub.f32 %v1629_v40, %v688_v63  ;;  %v855_v47 = vmul.f32 1.442695, %v770_v20 }
 0x2f7   : > { %v948_v2 = vpack.c.bf16 %v1226_v32, %v1228_v22 }
 0x2f8   : > { %v857_v12 = vmul.f32 1.442695, %v771_v57  ;;  %v859_v13 = vmul.f32 1.442695, %v772_v41  ;;  %1237 = vpow2.f32 %v853_v51 }
 0x2f9   : > { %981 = vmatprep.subr.bf16.mxu0 %v948_v2 }
 0x2fa   : > { %1239 = vpow2.f32 %v857_v12  ;;  %v1230_v45 = vpop.eup %1229 }
 0x2fb   : > { %1241 = vpow2.f32 %v859_v13  ;;  %982 = vmatpush1.bf16.xpose.msra.mxu0 %v947_v34  ;;  %v691_v36 = vpop.xlane.xlu1 %690 }
 0x2fc   : > { %v1232_v37 = vpop.eup %1231  ;;  %1243 = vpow2.f32 %v855_v47  ;;  %v773_v24 = vsub.f32 %v1633_v42, %v691_v36  ;;  %v774_v25 = vsub.f32 %v1635_v43, %v691_v36 }
 0x2fd   : > { %v1234_v38 = vpop.eup %1233  ;;  %v694_v0 = vpop.xlane.xlu0 %693  ;;  %v949_v40 = vpack.c.bf16 %v1232_v37, %v1230_v45 }
 0x2fe   : > { %v1236_v29 = vpop.eup %1235  ;;  %v861_v26 = vmul.f32 1.442695, %v773_v24  ;;  %v775_v28 = vsub.f32 %v1637_v44, %v694_v0  ;;  %v776_v14 = vsub.f32 %v1641_v46, %v694_v0  ;;  %v863_v23 = vmul.f32 1.442695, %v774_v25 }
 0x2ff   : > { %v950_v16 = vpack.c.bf16 %v1234_v38, %v1236_v29 }
 0x300   : > { %v865_v59 = vmul.f32 1.442695, %v775_v28  ;;  %v867_v7 = vmul.f32 1.442695, %v776_v14  ;;  %1245 = vpow2.f32 %v861_v26 }
 0x301   : > { %983 = vmatprep.subr.bf16.mxu0 %v950_v16 }
 0x302   : > { %1247 = vpow2.f32 %v865_v59  ;;  %v1238_v8 = vpop.eup %1237 }
 0x303   : > { %1249 = vpow2.f32 %v867_v7  ;;  %984 = vmatpush1.bf16.xpose.msra.mxu0 %v949_v40  ;;  %v697_v42 = vpop.xlane.xlu1 %696 }
 0x304   : > { %v1240_v43 = vpop.eup %1239  ;;  %1251 = vpow2.f32 %v863_v23  ;;  %v777_v6 = vsub.f32 %v1645_v48, %v697_v42  ;;  %v778_v18 = vsub.f32 %v1647_v49, %v697_v42 }
 0x305   : > { %v1242_v44 = vpop.eup %1241  ;;  %v700_v19 = vpop.xlane.xlu0 %699  ;;  %v951_v46 = vpack.c.bf16 %v1240_v43, %v1238_v8 }
 0x306   : > { %v1244_v53 = vpop.eup %1243  ;;  %v869_v9 = vmul.f32 1.442695, %v777_v6  ;;  %v779_v30 = vsub.f32 %v1649_v50, %v700_v19  ;;  %v780_v31 = vsub.f32 %v1653_v52, %v700_v19  ;;  %v871_v20 = vmul.f32 1.442695, %v778_v18 }
 0x307   : > { %v952_v11 = vpack.c.bf16 %v1242_v44, %v1244_v53 }
 0x308   : > { %v873_v32 = vmul.f32 1.442695, %v779_v30  ;;  %v875_v63 = vmul.f32 1.442695, %v780_v31  ;;  %1253 = vpow2.f32 %v869_v9 }
 0x309   : > { %985 = vmatprep.subr.bf16.mxu0 %v952_v11 }
 0x30a   : > { %1255 = vpow2.f32 %v873_v32  ;;  %v1246_v34 = vpop.eup %1245 }
 0x30b   : > { %1257 = vpow2.f32 %v875_v63  ;;  %986 = vmatpush1.bf16.xpose.msra.mxu0 %v951_v46  ;;  %v703_v48 = vpop.xlane.xlu1 %702 }
 0x30c   : > { %v1248_v49 = vpop.eup %1247  ;;  %1259 = vpow2.f32 %v871_v20  ;;  %v781_v22 = vsub.f32 %v1657_v54, %v703_v48  ;;  %v782_v51 = vsub.f32 %v1659_v55, %v703_v48 }
 0x30d   : > { %v1250_v50 = vpop.eup %1249  ;;  %v706_v57 = vpop.xlane.xlu0 %705  ;;  %v953_v52 = vpack.c.bf16 %v1248_v49, %v1246_v34 }
 0x30e   : > { %v1252_v41 = vpop.eup %1251  ;;  %v877_v2 = vmul.f32 1.442695, %v781_v22  ;;  %v783_v47 = vsub.f32 %v1661_v56, %v706_v57  ;;  %v784_v12 = vsub.f32 %v1665_v58, %v706_v57  ;;  %v879_v45 = vmul.f32 1.442695, %v782_v51 }
 0x30f   : > { %v954_v13 = vpack.c.bf16 %v1250_v50, %v1252_v41 }
 0x310   : > { %v881_v36 = vmul.f32 1.442695, %v783_v47  ;;  %v883_v37 = vmul.f32 1.442695, %v784_v12  ;;  %1261 = vpow2.f32 %v877_v2 }
 0x311   : > { %987 = vmatprep.subr.bf16.mxu0 %v954_v13 }
 0x312   : > { %1263 = vpow2.f32 %v881_v36  ;;  %v1254_v24 = vpop.eup %1253  ;;  %v1914_v36 = vld [vmem:[#allocation5_spill] sm:$0xff] }
 0x313   : > { %1265 = vpow2.f32 %v883_v37  ;;  %988 = vmatpush1.bf16.xpose.msra.mxu0 %v953_v52  ;;  %v709_v54 = vpop.xlane.xlu1 %708 }
 0x314   : > { %v1256_v55 = vpop.eup %1255  ;;  %1267 = vpow2.f32 %v879_v45  ;;  %v785_v25 = vsub.f32 %v1669_v60, %v709_v54  ;;  %v786_v38 = vsub.f32 %v1671_v61, %v709_v54 }
 0x315   : > { %v1258_v56 = vpop.eup %1257  ;;  %v712_v0 = vpop.xlane.xlu0 %711  ;;  %v955_v58 = vpack.c.bf16 %v1256_v55, %v1254_v24 }
 0x316   : > { %v1260_v40 = vpop.eup %1259  ;;  %v885_v29 = vmul.f32 1.442695, %v785_v25  ;;  %v787_v26 = vsub.f32 %v1673_v62, %v712_v0  ;;  %v788_v28 = vsub.f32 %v1677_v1, %v712_v0  ;;  %v887_v16 = vmul.f32 1.442695, %v786_v38 }
 0x317   : > { %v956_v14 = vpack.c.bf16 %v1258_v56, %v1260_v40  ;;  %v1915_v56 = vld [vmem:[#allocation6_spill] sm:$0xff] }
 0x318   : > { %v889_v23 = vmul.f32 1.442695, %v787_v26  ;;  %v891_v59 = vmul.f32 1.442695, %v788_v28  ;;  %1269 = vpow2.f32 %v885_v29 }
 0x319   : > { %989 = vmatprep.subr.bf16.mxu0 %v956_v14 }
 0x31a   : > { %1271 = vpow2.f32 %v889_v23  ;;  %v1262_v7 = vpop.eup %1261 }
 0x31b   : > { %1273 = vpow2.f32 %v891_v59  ;;  %990 = vmatpush1.bf16.xpose.msra.mxu0 %v955_v58  ;;  %v715_v60 = vpop.xlane.xlu1 %714  ;;  %v1916_v58 = vld [vmem:[#allocation7_spill] sm:$0xff]  ;;  %v1918_v59 = vld [vmem:[#allocation9_spill] sm:$0xff] }
 0x31c   : > { %v1264_v61 = vpop.eup %1263  ;;  %1275 = vpow2.f32 %v887_v16  ;;  %v789_v8 = vsub.f32 %v1681_v3, %v715_v60  ;;  %v790_v42 = vsub.f32 %v1683_v4, %v715_v60  ;;  %v1917_v16 = vld [vmem:[#allocation8_spill] sm:$0xff] }
 0x31d   : > { %v1266_v62 = vpop.eup %1265  ;;  %v718_v43 = vpop.xlane.xlu0 %717  ;;  %v957_v1 = vpack.c.bf16 %v1264_v61, %v1262_v7 }
 0x31e   : > { %v1268_v6 = vpop.eup %1267  ;;  %v893_v18 = vmul.f32 1.442695, %v789_v8  ;;  %v791_v44 = vsub.f32 %v1685_v5, %v718_v43  ;;  %v792_v19 = vsub.f32 %v1689_v10, %v718_v43  ;;  %v895_v53 = vmul.f32 1.442695, %v790_v42 }
 0x31f   : > { %v958_v46 = vpack.c.bf16 %v1266_v62, %v1268_v6  ;;  %v1919_v6 = vld [vmem:[#allocation10_spill] sm:$0xff] }
 0x320   : > { %v897_v9 = vmul.f32 1.442695, %v791_v44  ;;  %v899_v30 = vmul.f32 1.442695, %v792_v19  ;;  %1277 = vpow2.f32 %v893_v18  ;;  %v1920_v44 = vld [vmem:[#allocation11_spill] sm:$0xff] }
 0x321   : > { %991 = vmatprep.subr.bf16.mxu0 %v958_v46 }
 0x322   : > { %1279 = vpow2.f32 %v897_v9  ;;  %v1270_v31 = vpop.eup %1269 }
 0x323   : > { %1281 = vpow2.f32 %v899_v30  ;;  %992 = vmatpush1.bf16.xpose.msra.mxu0 %v957_v1  ;;  %v721_v3 = vpop.xlane.xlu1 %720 }
 0x324   : > { %v1272_v4 = vpop.eup %1271  ;;  %1283 = vpow2.f32 %v895_v53  ;;  %v793_v11 = vsub.f32 %v1693_v15, %v721_v3  ;;  %v794_v20 = vsub.f32 %v1695_v17, %v721_v3 }
 0x325   : > { %v1274_v5 = vpop.eup %1273  ;;  %v724_v32 = vpop.xlane.xlu0 %723  ;;  %v959_v10 = vpack.c.bf16 %v1272_v4, %v1270_v31  ;;  %v1921_v4 = vld [vmem:[#allocation12_spill] sm:$0xff] }
 0x326   : > { %v1276_v63 = vpop.eup %1275  ;;  %v901_v34 = vmul.f32 1.442695, %v793_v11  ;;  %v795_v48 = vsub.f32 %v1697_v21, %v724_v32  ;;  %v796_v49 = vsub.f32 %v1701_v27, %v724_v32  ;;  %v903_v51 = vmul.f32 1.442695, %v794_v20  ;;  %v1922_v20 = vld [vmem:[#allocation13_spill] sm:$0xff] }
 0x327   : > { %v960_v22 = vpack.c.bf16 %v1274_v5, %v1276_v63 }
 0x328   : > { %v905_v50 = vmul.f32 1.442695, %v795_v48  ;;  %v907_v57 = vmul.f32 1.442695, %v796_v49  ;;  %1285 = vpow2.f32 %v901_v34 }
 0x329   : > { %993 = vmatprep.subr.bf16.mxu0 %v960_v22  ;;  %v1923_v22 = vld [vmem:[#allocation14_spill] sm:$0xff] }
 0x32a   : > { %1287 = vpow2.f32 %v905_v50  ;;  %v1278_v52 = vpop.eup %1277  ;;  %v1924_v50 = vld [vmem:[#allocation15_spill] sm:$0xff] }
 0x32b   : > { %1289 = vpow2.f32 %v907_v57  ;;  %994 = vmatpush1.bf16.xpose.msra.mxu0 %v959_v10  ;;  %v727_v15 = vpop.xlane.xlu1 %726 }
 0x32c   : > { %v1280_v17 = vpop.eup %1279  ;;  %1291 = vpow2.f32 %v903_v51  ;;  %v797_v41 = vsub.f32 %v1705_v33, %v727_v15  ;;  %v798_v2 = vsub.f32 %v1707_v35, %v727_v15 }
 0x32d   : > { %v1282_v21 = vpop.eup %1281  ;;  %v730_v47 = vpop.xlane.xlu0 %729  ;;  %v961_v27 = vpack.c.bf16 %v1280_v17, %v1278_v52 }
 0x32e   : > { %v1284_v12 = vpop.eup %1283  ;;  %v909_v13 = vmul.f32 1.442695, %v797_v41  ;;  %v799_v45 = vsub.f32 %v1709_v39, %v730_v47  ;;  %v800_v37 = vsub.f32 %v1914_v36, %v730_v47  ;;  %v911_v54 = vmul.f32 1.442695, %v798_v2  ;;  %v1925_v47 = vld [vmem:[#allocation16_spill] sm:$0xff] }
 0x32f   : > { %v962_v24 = vpack.c.bf16 %v1282_v21, %v1284_v12  ;;  %v1926_v12 = vld [vmem:[#allocation17_spill] sm:$0xff] }
 0x330   : > { %v913_v55 = vmul.f32 1.442695, %v799_v45  ;;  %v915_v25 = vmul.f32 1.442695, %v800_v37  ;;  %1293 = vpow2.f32 %v909_v13 }
 0x331   : > { %995 = vmatprep.subr.bf16.mxu0 %v962_v24 }
 0x332   : > { %1295 = vpow2.f32 %v913_v55  ;;  %v1286_v38 = vpop.eup %1285 }
 0x333   : > { %1297 = vpow2.f32 %v915_v25  ;;  %996 = vmatpush1.bf16.xpose.msra.mxu0 %v961_v27  ;;  %v733_v33 = vpop.xlane.xlu1 %732 }
 0x334   : > { %v1288_v35 = vpop.eup %1287  ;;  %1299 = vpow2.f32 %v911_v54  ;;  %v801_v0 = vsub.f32 %v1915_v56, %v733_v33  ;;  %v802_v40 = vsub.f32 %v1916_v58, %v733_v33  ;;  %v1927_v54 = vld [vmem:[#allocation19_spill] sm:$0xff] }
 0x335   : > { %v1290_v39 = vpop.eup %1289  ;;  %v736_v29 = vpop.xlane.xlu0 %735  ;;  %v963_v26 = vpack.c.bf16 %v1288_v35, %v1286_v38 }
 0x336   : > { %v1292_v28 = vpop.eup %1291  ;;  %v917_v14 = vmul.f32 1.442695, %v801_v0  ;;  %v803_v23 = vsub.f32 %v1917_v16, %v736_v29  ;;  %v804_v7 = vsub.f32 %v1918_v59, %v736_v29  ;;  %v919_v61 = vmul.f32 1.442695, %v802_v40  ;;  %v1928_v16 = vld [vmem:[#allocation18_spill] sm:$0xff] }
 0x337   : > { %v964_v60 = vpack.c.bf16 %v1290_v39, %v1292_v28 }
 0x338   : > { %v921_v8 = vmul.f32 1.442695, %v803_v23  ;;  %v923_v42 = vmul.f32 1.442695, %v804_v7  ;;  %1301 = vpow2.f32 %v917_v14 }
 0x339   : > { %997 = vmatprep.subr.bf16.mxu0 %v964_v60  ;;  %v1018_v60 = vlaneseq }
 0x33a   : > { %1303 = vpow2.f32 %v921_v8  ;;  %v1294_v62 = vpop.eup %1293 }
 0x33b   : > { %1305 = vpow2.f32 %v923_v42  ;;  %998 = vmatpush1.bf16.xpose.msra.mxu0 %v963_v26  ;;  %v739_v43 = vpop.xlane.xlu1 %738 }
 0x33c   : > { %v1296_v1 = vpop.eup %1295  ;;  %1307 = vpow2.f32 %v919_v61  ;;  %v805_v18 = vsub.f32 %v1919_v6, %v739_v43  ;;  %v806_v19 = vsub.f32 %v1920_v44, %v739_v43 }
 0x33d   : > { %v1298_v46 = vpop.eup %1297  ;;  %v742_v53 = vpop.xlane.xlu0 %741  ;;  %v965_v9 = vpack.c.bf16 %v1296_v1, %v1294_v62  ;;  %v1019_v62 = vshrl.u32 %v1018_v60, 7 }
 0x33e   : > { %v1300_v30 = vpop.eup %1299  ;;  %v925_v31 = vmul.f32 1.442695, %v805_v18  ;;  %v927_v3 = vmul.f32 1.442695, %v806_v19  ;;  %v807_v11 = vsub.f32 %v1921_v4, %v742_v53  ;;  %v808_v5 = vsub.f32 %v1922_v20, %v742_v53  ;;  %v1329_v53 = vld [vmem:[%s1493_s15] sm:$0xff] }
 0x33f   : > { %v966_v32 = vpack.c.bf16 %v1298_v46, %v1300_v30  ;;  %v1020_v43 = vsub.s32 4, %v1019_v62 }
 0x340   : > { %1309 = vpow2.f32 %v925_v31  ;;  %v929_v10 = vmul.f32 1.442695, %v807_v11  ;;  %v931_v63 = vmul.f32 1.442695, %v808_v5  ;;  %v1330_v31 = vld [vmem:[%s1493_s15 + $0x8] sm:$0xff]  ;;  %s1396_s15 = smov [#allocation2]  }
 0x341   : > { %1311 = vpow2.f32 %v927_v3  ;;  %999 = vmatprep.subr.bf16.mxu0 %v966_v32  ;;  %s1335_s14 = sshll.u32 %s1396_s15, 4  ;;  %s1336_s14 = int_to_ptr.vmem [resolvable:$false] %s1335_s14 }
 0x342   : > { %1313 = vpow2.f32 %v929_v10  ;;  %v1302_v34 = vpop.eup %1301  ;;  %s1337_s16 = scalar_lea.vmem %s1336_s14, 512  ;;  %p1338_p0 = scmp.lt.s32.totalorder %s1838_s9, %s1336_s14 }
 0x343   : > { %1315 = vpow2.f32 %v931_v63  ;;  %1000 = vmatpush1.bf16.xpose.msra.mxu0 %v965_v9  ;;  %v745_v48 = vpop.xlane.xlu1 %744  ;;  %p1339_p1 = scmp.lt.s32.totalorder %s1337_s16, %s1331_s13 }
 0x344   : > { %v1304_v49 = vpop.eup %1303  ;;  %v809_v51 = vsub.f32 %v1923_v22, %v745_v48  ;;  %v810_v57 = vsub.f32 %v1924_v50, %v745_v48 }
 0x345   : > { %v1306_v52 = vpop.eup %1305  ;;  %v748_v15 = vpop.xlane.xlu0 %747  ;;  %v967_v17 = vpack.c.bf16 %v1304_v49, %v1302_v34  ;;  %p1340_p2 = por %p1339_p1, %p1338_p0 }
 0x346   : > { %v1308_v41 = vpop.eup %1307  ;;  %v933_v2 = vmul.f32 1.442695, %v809_v51  ;;  %v935_v21 = vmul.f32 1.442695, %v810_v57  ;;  %v811_v27 = vsub.f32 %v1925_v47, %v748_v15  ;;  %v812_v13 = vsub.f32 %v1926_v12, %v748_v15 }
 0x347   : > { %v261_v45 = vpop.permute.xlu1 %260  ;;  %v968_v36 = vpack.c.bf16 %v1306_v52, %v1308_v41  ;;  %p1341_p3 = pnand %p1340_p2, %p1334_p13 }
 0x348   : > { %1317 = vpow2.f32 %v933_v2  ;;  %v937_v37 = vmul.f32 1.442695, %v811_v27  ;;  %v939_v24 = vmul.f32 1.442695, %v812_v13  ;;  %v350_v55 = vadd.f32 %v1927_v54, %v261_v45 }
 0x349   : > { %1319 = vpow2.f32 %v935_v21  ;;  %1001 = vmatprep.subr.bf16.mxu0 %v968_v36  ;;  %v348_v23 = vadd.f32 %v1928_v16, %v261_v45 }
 0x34a   : > { %v1310_v25 = vpop.eup %1309  ;;  %1321 = vpow2.f32 %v937_v37  ;;  %v974_v33 = vpack.c.bf16 %v350_v55, %v350_v55 }
 0x34b   : > { %v1312_v38 = vpop.eup %1311  ;;  %1323 = vpow2.f32 %v939_v24  ;;  %1002 = vmatpush1.bf16.xpose.msra.mxu0 %v967_v17  ;;  %v973_v59 = vpack.c.bf16 %v348_v23, %v348_v23 }
 0x34c   : > { %v1314_v35 = vpop.eup %1313  ;;  %1007 = vmatprep.mubr.bf16.mxu0 %v974_v33 }
 0x34d   : > { %v1316_v56 = vpop.eup %1315  ;;  %v969_v0 = vpack.c.bf16 %v1314_v35, %v1310_v25  ;;  %v1034_v30 = vpop.permute.xlu0 %1033 }
 0x34e   : > { %v970_v58 = vpack.c.bf16 %v1316_v56, %v1312_v38 }
 0x350   : > { %1003 = vmatprep.subr.bf16.mxu0 %v970_v58 }
 0x352   : > { %v1318_v40 = vpop.eup %1317 }
 0x353   : > { %v1320_v39 = vpop.eup %1319  ;;  %1004 = vmatpush1.bf16.xpose.msra.mxu0 %v969_v0 }
 0x354   : > { %v1322_v29 = vpop.eup %1321 }
 0x355   : > { %v1324_v26 = vpop.eup %1323  ;;  %v971_v28 = vpack.c.bf16 %v1322_v29, %v1318_v40 }
 0x356   : > { %v972_v14 = vpack.c.bf16 %v1324_v26, %v1320_v39 }
 0x358   : > { %1005 = vmatprep.subr.bf16.mxu0 %v972_v14 }
 0x35b   : > { %1006 = vmatpush1.bf16.xpose.msra.mxu0 %v971_v28 }
 0x362   : > { %1008 = vmatmul.mubr.bf16.vlgmr.msra.gmra.mrb[12].mxu0 %v973_v59 }
 0x435   : > { %v1009_v7 = vpop.f32.mrb[12].mxu0 }
 0x436   : > { %1325 = vrcp.f32 %v1009_v7  ;;  %v1011_v61 = vpop.f32.mrb[13].mxu0 }
 0x437   : > { %1327 = vrcp.f32 %v1011_v61  ;;  %v1013_v8 = vpop.f32.mrb[14].mxu0 }
 0x438   : > { %v1014_v42 = vpop.f32.mrb[15].mxu0 }
 0x440   : > { %v1326_v1 = vpop.eup %1325 }
 0x441   : > { %v1328_v6 = vpop.eup %1327  ;;  %v1021_v18 = vrot.slane %v1326_v1, %v1020_v43 }
 0x442   : > { %v1025_v44 = vrot.slane %v1328_v6, %v1020_v43 }
 0x443   : > { %v1026_v19 = vmul.f32 %v1021_v18, %v1009_v7 }
 0x444   : > { %v1027_v46 = vmul.f32 %v1025_v44, %v1011_v61 }
 0x445   : > { %v1028_v9 = vadd.f32 %v1329_v53, %v1026_v19 }
 0x446   : > { %v1029_v3 = vadd.f32 %v1330_v31, %v1027_v46 }
 0x447   : > { %v1036_v4 = vadd.f32 %v1034_v30, %v1028_v9 }
 0x448   : > { %v1037_v11 = vadd.f32 %v1034_v30, %v1029_v3 }
 0x449   : > { %1038 = vst [vmem:[%s217_s8] sm:$0xff] %v1036_v4 }
 0x44a   : > { %1039 = vst [vmem:[%s217_s8 + $0x8] sm:$0xff] %v1037_v11 }
 0x44b   : > { %1344 = shalt.err (!%p1341_p3)
}
 0x44c   : > { %s1345_s17 = scalar_lea.hbm %s1836_s12, 256  ;;  %s1349_s26 = scalar_lea.hbm %s1883_s5, 512 }
 0x44d   : > { %p1346_p4 = scmp.ne.s32.totalorder %s1836_s12, %s1345_s17  ;;  %p1350_p9 = scmp.lt.u32.totalorder %s1836_s12, %s1883_s5 }
 0x44e   : > { %p1351_p10 = scmp.lt.u32.totalorder %s1349_s26, %s1345_s17  ;;  %p1353_p12 = scmp.lt.u32.totalorder %s1345_s17, %s1836_s12 }
 0x44f   : > { %p1347_p7 = pnand %p1346_p4, %p1465_p5 }
 0x450   : > { %p1352_p11 = por %p1351_p10, %p1350_p9 }
 0x451   : > { %p1348_p8 = pneg %p1347_p7 }
 0x452   : > { %p1354_p13 = por %p1353_p12, %p1352_p11 }
 0x454   : > { %p1355_p0 = pnand %p1354_p13, %p1348_p8 }
 0x456   : > { %1358 = shalt.err (!%p1355_p0)
}
 0x457   : > { %1152 = dma.vmem_to_hbm [thread:$0]  (%p1465_p5), %s1838_s9, 256, %s1836_s12, %s1041_s22  }
 0x458 PF: > { %p1158_p1 = scmp.ge.s32.totalorder %s1393_s21, 2  ;;  %s1067_s7 = sand.u32 1, %s1381_s18  }
 0x459   : > { %s1068_s8 = scalar_lea.sflag [#allocation3], %s1067_s7 }
 0x45a   : > { %p1155_p2 = pnand %p1158_p1, %p1469_p6 }
 0x45c   : > { %1376 = dma.done.wait (!%p1155_p2), %s1068_s8, 256  }
 0x45d   : > { %1378 = vsyncadd (!%p1155_p2), %s1068_s8, 4294967040  ;;  %p15_p3 = scmp.ge.s32.totalorder %s1452_s24, 4   ;;  %s1929_s18 = smov %s1385_s19 }
 0x45e   : > { %s1930_s19 = smov %s1389_s20  ;;  %s1931_s20 = smov %s1463_s27 }
 0x45f   : > { %s1932_s21 = smov %s1452_s24  ;;  %17 = sbr.rel (!%p15_p3) target bundleno = 3 (0x3), region = 75 }
 0x466   :  { %1073 = vsyncpa [#allocation3], 1 }
 0x467   :  { %1075 = vsyncpa [#allocation3 + $0x1], 1 }

</bundles_post_ra>
